<compile_context>
chip_gen: v5e
topology: v5e:2x2
jax: 0.10.0
libtpu: 0.0.40
codegen_flags: <defaults>
</compile_context>

<pallas_src>
import functools

import jax
import jax.numpy as jnp
from jax import lax
from jax.experimental import pallas as pl
from jax.experimental.pallas import tpu as pltpu


# ----------------------------- Pallas kernel --------------------------------
def news_lstm_kernel(nsteps_ref,                      # SMEM [1] int32: idx+1 (>=1)
                     xg0_ref,                         # VMEM [T, Bp, 4H]: x@Wih0^T + b_ih0 + b_hh0
                     wblk_ref,                        # [2H, 8H]: [[whh0, wih1],[0, whh1]]
                     b1_ref,                          # [1, 4H]: b_ih1 + b_hh1
                     fc1w_ref, fc1b_ref,              # [H, F1p], [1, F1p]  (lane-padded)
                     fc2w_ref, fc2b_ref,              # [F1p, Cp], [1, Cp]  (lane-padded)
                     out_ref):                        # VMEM [Bp, Cp]
    T, Bp, H4 = xg0_ref.shape
    H = H4 // 4
    nsteps = nsteps_ref[0]

    # ---- loop-invariant setup (hoisted: JAX does not CSE broadcast_in_dim) ----
    lane = lax.broadcasted_iota(jnp.int32, (Bp, 4 * H), 1)
    is_g = (lane >= 2 * H) & (lane < 3 * H)            # g-gate lanes [2H, 3H)
    gate_scale = jnp.where(is_g, jnp.float32(2.0), jnp.float32(1.0))
    b1_b = jnp.broadcast_to(b1_ref[...], (Bp, 4 * H))
    wblk = wblk_ref[...]                               # [2H, 8H]
    zeros_h = jnp.zeros((Bp, H), jnp.float32)

    def cell(g, c):
        # PyTorch gate order along 4H: [i | f | g | o].
        # Single EUP push for all gates: tanh(x) = 2*sigmoid(2x) - 1.
        s = jax.nn.sigmoid(g * gate_scale)
        act = jnp.where(is_g, 2.0 * s - 1.0, s)
        i_g = act[:, 0 * H:1 * H]
        f_g = act[:, 1 * H:2 * H]
        g_g = act[:, 2 * H:3 * H]
        o_g = act[:, 3 * H:4 * H]
        c_new = f_g * c + i_g * g_g
        h_new = o_g * jnp.tanh(c_new)
        return h_new, c_new

    # ---- peeled step 0: layer-0 at t=0 (h_{-1}=c_{-1}=0 -> no matmul) ---------
    h0, c0 = cell(xg0_ref[0], zeros_h)
    h1, c1 = zeros_h, zeros_h

    # ---- fused wavefront: step s = layer-0 @ t=s  +  layer-1 @ t=s-1 ----------
    def body(s, carry):
        h0, c0, h1, c1 = carry
        lhs = jnp.concatenate([h0, h1], axis=1)                       # [Bp, 2H]
        g = jnp.dot(lhs, wblk, preferred_element_type=jnp.float32)    # [Bp, 8H]
        g0 = g[:, :4 * H] + xg0_ref[s]
        g1 = g[:, 4 * H:] + b1_b
        h0n, c0n = cell(g0, c0)
        h1n, c1n = cell(g1, c1)
        return h0n, c0n, h1n, c1n

    h0, c0, h1, c1 = lax.fori_loop(1, nsteps, body, (h0, c0, h1, c1))

    # ---- peeled final step: layer-1 at t = nsteps-1 ---------------------------
    lhs = jnp.concatenate([h0, h1], axis=1)                           # [Bp, 2H]
    g1 = jnp.dot(lhs, wblk[:, 4 * H:],
                 preferred_element_type=jnp.float32) + b1_b
    h1, _ = cell(g1, c1)                                              # == out[:, idx, :]

    # ---- FC head (lane-dense padded widths) -----------------------------------
    a1 = jnp.maximum(
        jnp.dot(h1, fc1w_ref[...], preferred_element_type=jnp.float32)
        + fc1b_ref[...], 0.0)
    out_ref[...] = (jnp.dot(a1, fc2w_ref[...], preferred_element_type=jnp.float32)
                    + fc2b_ref[...])


# ------------------------------ JAX wrapper ----------------------------------
@functools.partial(jax.jit, static_argnames=("input_size",))
def news_lstm_eye_forward(tokens, lengths, params, *, input_size):
    """tokens: [B, T] int32, lengths: [B] int32."""
    del input_size  # implied by w_ih0's shape
    B, T = tokens.shape
    H = params["w_hh0"].shape[1]
    C = params["fc2_w"].shape[0]
    F1 = params["fc1_w"].shape[0]

    Bp = ((B + 7) // 8) * 8          # sublane-pad batch
    F1p = 128                        # lane-dense fc1 width
    Cp = 128                         # lane-dense output width

    # eye(I)[tok] @ W_ih0^T == row gather of W_ih0^T  (+ summed layer-0 biases)
    emb0 = params["w_ih0"].T                                   # [I, 4H]
    b0 = params["b_ih0"] + params["b_hh0"]                     # [4H]
    xg0 = emb0[tokens] + b0                                    # [B, T, 4H]
    xg0 = jnp.transpose(xg0, (1, 0, 2))                        # [T, B, 4H]
    xg0 = jnp.pad(xg0, ((0, 0), (0, Bp - B), (0, 0)))          # [T, Bp, 4H]

    # Fused block weight for the wavefront recurrence: [[whh0, wih1],[0, whh1]]
    whh0 = params["w_hh0"].T                                   # [H, 4H]
    wih1 = params["w_ih1"].T                                   # [H, 4H]
    whh1 = params["w_hh1"].T                                   # [H, 4H]
    wblk = jnp.concatenate(
        [jnp.concatenate([whh0, wih1], axis=1),
         jnp.concatenate([jnp.zeros_like(whh1), whh1], axis=1)], axis=0)  # [2H, 8H]
    b1 = (params["b_ih1"] + params["b_hh1"]).reshape(1, 4 * H)

    fc1w = jnp.pad(params["fc1_w"].T, ((0, 0), (0, F1p - F1)))           # [H, F1p]
    fc1b = jnp.pad(params["fc1_b"], (0, F1p - F1)).reshape(1, F1p)
    fc2w = jnp.pad(params["fc2_w"].T, ((0, F1p - F1), (0, Cp - C)))      # [F1p, Cp]
    fc2b = jnp.pad(params["fc2_b"], (0, Cp - C)).reshape(1, Cp)

    # sliceTensor = lengths - 1 ; only its last element is consumed.
    idx = jnp.clip(lengths[-1].astype(jnp.int32) - 1, 0, T - 1)
    nsteps = (idx + 1).reshape(1).astype(jnp.int32)

    smem = pl.BlockSpec(memory_space=pltpu.MemorySpace.SMEM)
    vmem = pl.BlockSpec(memory_space=pltpu.MemorySpace.VMEM)

    flops = (2 * T * Bp * (2 * H) * (8 * H)          # fused recurrence (upper bound)
             + 2 * Bp * H * F1p + 2 * Bp * F1p * Cp)  # FC head
    bytes_accessed = 4 * (xg0.size + wblk.size + b1.size + fc1w.size + fc1b.size
                          + fc2w.size + fc2b.size + Bp * Cp)
    cost = pl.CostEstimate(flops=flops,
                           transcendentals=2 * T * Bp * 5 * H,
                           bytes_accessed=bytes_accessed)

    out = pl.pallas_call(
        news_lstm_kernel,
        out_shape=jax.ShapeDtypeStruct((Bp, Cp), jnp.float32),
        in_specs=[smem] + [vmem] * 7,
        out_specs=vmem,
        cost_estimate=cost,
    )(nsteps, xg0, wblk, b1, fc1w, fc1b, fc2w, fc2b)

    return out[:B, :C]


# ------------------------- pure-JAX reference (check) ------------------------
def reference_forward(tokens, lengths, params, *, input_size):
    H = params["w_hh0"].shape[1]
    x1 = jax.nn.one_hot(tokens, input_size, dtype=jnp.float32)   # [B, T, I]
    B, T, _ = x1.shape

    def run_layer(seq, wih, whh, bih, bhh):
        h = jnp.zeros((B, H), jnp.float32)
        c = jnp.zeros((B, H), jnp.float32)
        outs = []
        for t in range(T):
            g = seq[:, t, :] @ wih.T + bih + h @ whh.T + bhh
            i = jax.nn.sigmoid(g[:, 0 * H:1 * H])
            f = jax.nn.sigmoid(g[:, 1 * H:2 * H])
            gg = jnp.tanh(g[:, 2 * H:3 * H])
            o = jax.nn.sigmoid(g[:, 3 * H:4 * H])
            c = f * c + i * gg
            h = o * jnp.tanh(c)
            outs.append(h)
        return jnp.stack(outs, axis=1)                           # [B, T, H]

    l0 = run_layer(x1, params["w_ih0"], params["w_hh0"],
                   params["b_ih0"], params["b_hh0"])
    out = run_layer(l0, params["w_ih1"], params["w_hh1"],
                    params["b_ih1"], params["b_hh1"])
    slice_tensor = lengths.astype(jnp.int32) - 1
    slice_out2 = out[:, slice_tensor[-1], :]                     # [B, H]
    out1 = jnp.maximum(slice_out2 @ params["fc1_w"].T + params["fc1_b"], 0.0)
    return out1 @ params["fc2_w"].T + params["fc2_b"]


# ---------------------------------- main -------------------------------------
if __name__ == "__main__":
    # small shapes consistent with the module
    B, T = 2, 8            # batch, sequence length
    I = 16                 # input_size (vocab, eye embedding dim)
    H = 32                 # hidden_size
    C = 4                  # num_classes
    F1 = 50                # fc_1 output dim (fixed in module)

    key = jax.random.PRNGKey(0)
    ks = jax.random.split(key, 16)
    s = 1.0 / jnp.sqrt(H)

    params = {
        "w_ih0": jax.random.uniform(ks[0], (4 * H, I), jnp.float32, -s, s),
        "w_hh0": jax.random.uniform(ks[1], (4 * H, H), jnp.float32, -s, s),
        "b_ih0": jax.random.uniform(ks[2], (4 * H,), jnp.float32, -s, s),
        "b_hh0": jax.random.uniform(ks[3], (4 * H,), jnp.float32, -s, s),
        "w_ih1": jax.random.uniform(ks[4], (4 * H, H), jnp.float32, -s, s),
        "w_hh1": jax.random.uniform(ks[5], (4 * H, H), jnp.float32, -s, s),
        "b_ih1": jax.random.uniform(ks[6], (4 * H,), jnp.float32, -s, s),
        "b_hh1": jax.random.uniform(ks[7], (4 * H,), jnp.float32, -s, s),
        "fc1_w": jax.random.uniform(ks[8], (F1, H), jnp.float32, -s, s),
        "fc1_b": jax.random.uniform(ks[9], (F1,), jnp.float32, -s, s),
        "fc2_w": jax.random.uniform(ks[10], (C, F1), jnp.float32, -s, s),
        "fc2_b": jax.random.uniform(ks[11], (C,), jnp.float32, -s, s),
    }

    tokens = jax.random.randint(ks[12], (B, T), 0, I, dtype=jnp.int32)   # x[0]
    lengths = jnp.array([5, 7], dtype=jnp.int32)                         # x[1]

    out = news_lstm_eye_forward(tokens, lengths, params, input_size=I)
    out = jax.block_until_ready(out)

    ref = reference_forward(tokens, lengths, params, input_size=I)
    assert out.shape == (B, C)
    assert jnp.allclose(out, ref, rtol=1e-4, atol=1e-4), (out, ref)

    print("KERNEL_OK")
</pallas_src>

<mosaic_0001>
module attributes {stable_mosaic.version = 11 : i64} {
  func.func @news_lstm_kernel(%arg0: memref<1xi32, #tpu.memory_space<smem>>, %arg1: memref<8x8x128xf32, #tpu.memory_space<vmem>>, %arg2: memref<64x256xf32, #tpu.memory_space<vmem>>, %arg3: memref<1x128xf32, #tpu.memory_space<vmem>>, %arg4: memref<32x128xf32, #tpu.memory_space<vmem>>, %arg5: memref<1x128xf32, #tpu.memory_space<vmem>>, %arg6: memref<128x128xf32, #tpu.memory_space<vmem>>, %arg7: memref<1x128xf32, #tpu.memory_space<vmem>>, %arg8: memref<8x128xf32, #tpu.memory_space<vmem>>) attributes {dimension_semantics = [], scalar_prefetch = 0 : i64, scratch_operands = 0 : i64, tpu.core_type = #tpu.core_type<tc>} {
    %c0 = arith.constant 0 : index
    %0 = memref.load %arg0[%c0] : memref<1xi32, #tpu.memory_space<smem>>
    %1 = tpu.iota {dimensions = array<i32: 1>} : vector<8x128xi32>
    %c64_i32 = arith.constant 64 : i32
    %2 = vector.broadcast %c64_i32 : i32 to vector<8x128xi32>
    %3 = arith.cmpi sge, %1, %2 : vector<8x128xi32>
    %c96_i32 = arith.constant 96 : i32
    %4 = vector.broadcast %c96_i32 : i32 to vector<8x128xi32>
    %5 = arith.cmpi slt, %1, %4 : vector<8x128xi32>
    %6 = arith.andi %3, %5 : vector<8x128xi1>
    %cst = arith.constant 2.000000e+00 : f32
    %cst_0 = arith.constant 1.000000e+00 : f32
    %7 = vector.broadcast %cst : f32 to vector<8x128xf32>
    %8 = vector.broadcast %cst_0 : f32 to vector<8x128xf32>
    %9 = arith.select %6, %7, %8 : vector<8x128xi1>, vector<8x128xf32>
    %c0_1 = arith.constant 0 : index
    %c0_2 = arith.constant 0 : index
    %10 = vector.load %arg3[%c0_1, %c0_2] : memref<1x128xf32, #tpu.memory_space<vmem>>, vector<1x128xf32>
    %11 = vector.shape_cast %10 : vector<1x128xf32> to vector<1x128xf32>
    %12 = vector.broadcast %11 : vector<1x128xf32> to vector<8x128xf32>
    %c0_3 = arith.constant 0 : index
    %c0_4 = arith.constant 0 : index
    %13 = vector.load %arg2[%c0_3, %c0_4] : memref<64x256xf32, #tpu.memory_space<vmem>>, vector<64x256xf32>
    %cst_5 = arith.constant 0.000000e+00 : f32
    %14 = vector.broadcast %cst_5 : f32 to vector<8x32xf32>
    %c0_6 = arith.constant 0 : index
    %c0_7 = arith.constant 0 : index
    %c0_8 = arith.constant 0 : index
    %15 = vector.load %arg1[%c0_6, %c0_7, %c0_8] : memref<8x8x128xf32, #tpu.memory_space<vmem>>, vector<1x8x128xf32>
    %16 = vector.shape_cast %15 : vector<1x8x128xf32> to vector<8x128xf32>
    %17 = arith.mulf %16, %9 : vector<8x128xf32>
    %18 = arith.negf %17 : vector<8x128xf32>
    %19 = math.exp %18 : vector<8x128xf32>
    %cst_9 = arith.constant 1.000000e+00 : f32
    %20 = vector.broadcast %cst_9 : f32 to vector<8x128xf32>
    %21 = arith.addf %20, %19 : vector<8x128xf32>
    %22 = arith.divf %20, %21 : vector<8x128xf32>
    %cst_10 = arith.constant 2.000000e+00 : f32
    %23 = vector.broadcast %cst_10 : f32 to vector<8x128xf32>
    %24 = arith.mulf %23, %22 : vector<8x128xf32>
    %cst_11 = arith.constant 1.000000e+00 : f32
    %25 = vector.broadcast %cst_11 : f32 to vector<8x128xf32>
    %26 = arith.subf %24, %25 : vector<8x128xf32>
    %27 = arith.select %6, %26, %22 : vector<8x128xi1>, vector<8x128xf32>
    %28 = vector.extract_strided_slice %27 {offsets = [0, 0], sizes = [8, 32], strides = [1, 1]} : vector<8x128xf32> to vector<8x32xf32>
    %29 = vector.extract_strided_slice %27 {offsets = [0, 32], sizes = [8, 32], strides = [1, 1]} : vector<8x128xf32> to vector<8x32xf32>
    %30 = vector.extract_strided_slice %27 {offsets = [0, 64], sizes = [8, 32], strides = [1, 1]} : vector<8x128xf32> to vector<8x32xf32>
    %31 = vector.extract_strided_slice %27 {offsets = [0, 96], sizes = [8, 32], strides = [1, 1]} : vector<8x128xf32> to vector<8x32xf32>
    %32 = arith.mulf %29, %14 : vector<8x32xf32>
    %33 = arith.mulf %28, %30 : vector<8x32xf32>
    %34 = arith.addf %32, %33 : vector<8x32xf32>
    %35 = math.tanh %34 : vector<8x32xf32>
    %36 = arith.mulf %31, %35 : vector<8x32xf32>
    %c1_i32 = arith.constant 1 : i32
    %37 = arith.subi %0, %c1_i32 : i32
    %38 = arith.addi %c1_i32, %37 : i32
    %c1_i32_12 = arith.constant 1 : i32
    %39:4 = scf.for %arg9 = %c1_i32 to %38 step %c1_i32_12 iter_args(%arg10 = %36, %arg11 = %34, %arg12 = %14, %arg13 = %14) -> (vector<8x32xf32>, vector<8x32xf32>, vector<8x32xf32>, vector<8x32xf32>)  : i32 {
      %77 = tpu.concatenate %arg10, %arg12 in 1 : vector<8x32xf32>, vector<8x32xf32> -> vector<8x64xf32>
      %cst_30 = arith.constant dense<0.000000e+00> : vector<8x256xf32>
      %78 = tpu.matmul %77, %13, %cst_30 {dimension_numbers = #tpu.dot_dimension_numbers<[1], [0], [0], [1], [0, 0, 1, 1], [], []>} : vector<8x64xf32>, vector<64x256xf32>, vector<8x256xf32> -> vector<8x256xf32>
      %79 = vector.extract_strided_slice %78 {offsets = [0, 0], sizes = [8, 128], strides = [1, 1]} : vector<8x256xf32> to vector<8x128xf32>
      %80 = arith.index_cast %arg9 : i32 to index
      %c0_31 = arith.constant 0 : index
      %c0_32 = arith.constant 0 : index
      %81 = vector.load %arg1[%80, %c0_31, %c0_32] : memref<8x8x128xf32, #tpu.memory_space<vmem>>, vector<1x8x128xf32>
      %82 = vector.shape_cast %81 : vector<1x8x128xf32> to vector<8x128xf32>
      %83 = arith.addf %79, %82 : vector<8x128xf32>
      %84 = vector.extract_strided_slice %78 {offsets = [0, 128], sizes = [8, 128], strides = [1, 1]} : vector<8x256xf32> to vector<8x128xf32>
      %85 = arith.addf %84, %12 : vector<8x128xf32>
      %86 = arith.mulf %83, %9 : vector<8x128xf32>
      %87 = arith.negf %86 : vector<8x128xf32>
      %88 = math.exp %87 : vector<8x128xf32>
      %cst_33 = arith.constant 1.000000e+00 : f32
      %89 = vector.broadcast %cst_33 : f32 to vector<8x128xf32>
      %90 = arith.addf %89, %88 : vector<8x128xf32>
      %91 = arith.divf %89, %90 : vector<8x128xf32>
      %cst_34 = arith.constant 2.000000e+00 : f32
      %92 = vector.broadcast %cst_34 : f32 to vector<8x128xf32>
      %93 = arith.mulf %92, %91 : vector<8x128xf32>
      %cst_35 = arith.constant 1.000000e+00 : f32
      %94 = vector.broadcast %cst_35 : f32 to vector<8x128xf32>
      %95 = arith.subf %93, %94 : vector<8x128xf32>
      %96 = arith.select %6, %95, %91 : vector<8x128xi1>, vector<8x128xf32>
      %97 = vector.extract_strided_slice %96 {offsets = [0, 0], sizes = [8, 32], strides = [1, 1]} : vector<8x128xf32> to vector<8x32xf32>
      %98 = vector.extract_strided_slice %96 {offsets = [0, 32], sizes = [8, 32], strides = [1, 1]} : vector<8x128xf32> to vector<8x32xf32>
      %99 = vector.extract_strided_slice %96 {offsets = [0, 64], sizes = [8, 32], strides = [1, 1]} : vector<8x128xf32> to vector<8x32xf32>
      %100 = vector.extract_strided_slice %96 {offsets = [0, 96], sizes = [8, 32], strides = [1, 1]} : vector<8x128xf32> to vector<8x32xf32>
      %101 = arith.mulf %98, %arg11 : vector<8x32xf32>
      %102 = arith.mulf %97, %99 : vector<8x32xf32>
      %103 = arith.addf %101, %102 : vector<8x32xf32>
      %104 = math.tanh %103 : vector<8x32xf32>
      %105 = arith.mulf %100, %104 : vector<8x32xf32>
      %106 = arith.mulf %85, %9 : vector<8x128xf32>
      %107 = arith.negf %106 : vector<8x128xf32>
      %108 = math.exp %107 : vector<8x128xf32>
      %cst_36 = arith.constant 1.000000e+00 : f32
      %109 = vector.broadcast %cst_36 : f32 to vector<8x128xf32>
      %110 = arith.addf %109, %108 : vector<8x128xf32>
      %111 = arith.divf %109, %110 : vector<8x128xf32>
      %cst_37 = arith.constant 2.000000e+00 : f32
      %112 = vector.broadcast %cst_37 : f32 to vector<8x128xf32>
      %113 = arith.mulf %112, %111 : vector<8x128xf32>
      %cst_38 = arith.constant 1.000000e+00 : f32
      %114 = vector.broadcast %cst_38 : f32 to vector<8x128xf32>
      %115 = arith.subf %113, %114 : vector<8x128xf32>
      %116 = arith.select %6, %115, %111 : vector<8x128xi1>, vector<8x128xf32>
      %117 = vector.extract_strided_slice %116 {offsets = [0, 0], sizes = [8, 32], strides = [1, 1]} : vector<8x128xf32> to vector<8x32xf32>
      %118 = vector.extract_strided_slice %116 {offsets = [0, 32], sizes = [8, 32], strides = [1, 1]} : vector<8x128xf32> to vector<8x32xf32>
      %119 = vector.extract_strided_slice %116 {offsets = [0, 64], sizes = [8, 32], strides = [1, 1]} : vector<8x128xf32> to vector<8x32xf32>
      %120 = vector.extract_strided_slice %116 {offsets = [0, 96], sizes = [8, 32], strides = [1, 1]} : vector<8x128xf32> to vector<8x32xf32>
      %121 = arith.mulf %118, %arg13 : vector<8x32xf32>
      %122 = arith.mulf %117, %119 : vector<8x32xf32>
      %123 = arith.addf %121, %122 : vector<8x32xf32>
      %124 = math.tanh %123 : vector<8x32xf32>
      %125 = arith.mulf %120, %124 : vector<8x32xf32>
      scf.yield %105, %103, %125, %123 : vector<8x32xf32>, vector<8x32xf32>, vector<8x32xf32>, vector<8x32xf32>
    }
    %40 = tpu.concatenate %39#0, %39#2 in 1 : vector<8x32xf32>, vector<8x32xf32> -> vector<8x64xf32>
    %41 = vector.extract_strided_slice %13 {offsets = [0, 128], sizes = [64, 128], strides = [1, 1]} : vector<64x256xf32> to vector<64x128xf32>
    %cst_13 = arith.constant dense<0.000000e+00> : vector<8x128xf32>
    %42 = tpu.matmul %40, %41, %cst_13 {dimension_numbers = #tpu.dot_dimension_numbers<[1], [0], [0], [1], [0, 0, 1, 1], [], []>} : vector<8x64xf32>, vector<64x128xf32>, vector<8x128xf32> -> vector<8x128xf32>
    %43 = arith.addf %42, %12 : vector<8x128xf32>
    %44 = arith.mulf %43, %9 : vector<8x128xf32>
    %45 = arith.negf %44 : vector<8x128xf32>
    %46 = math.exp %45 : vector<8x128xf32>
    %cst_14 = arith.constant 1.000000e+00 : f32
    %47 = vector.broadcast %cst_14 : f32 to vector<8x128xf32>
    %48 = arith.addf %47, %46 : vector<8x128xf32>
    %49 = arith.divf %47, %48 : vector<8x128xf32>
    %cst_15 = arith.constant 2.000000e+00 : f32
    %50 = vector.broadcast %cst_15 : f32 to vector<8x128xf32>
    %51 = arith.mulf %50, %49 : vector<8x128xf32>
    %cst_16 = arith.constant 1.000000e+00 : f32
    %52 = vector.broadcast %cst_16 : f32 to vector<8x128xf32>
    %53 = arith.subf %51, %52 : vector<8x128xf32>
    %54 = arith.select %6, %53, %49 : vector<8x128xi1>, vector<8x128xf32>
    %55 = vector.extract_strided_slice %54 {offsets = [0, 0], sizes = [8, 32], strides = [1, 1]} : vector<8x128xf32> to vector<8x32xf32>
    %56 = vector.extract_strided_slice %54 {offsets = [0, 32], sizes = [8, 32], strides = [1, 1]} : vector<8x128xf32> to vector<8x32xf32>
    %57 = vector.extract_strided_slice %54 {offsets = [0, 64], sizes = [8, 32], strides = [1, 1]} : vector<8x128xf32> to vector<8x32xf32>
    %58 = vector.extract_strided_slice %54 {offsets = [0, 96], sizes = [8, 32], strides = [1, 1]} : vector<8x128xf32> to vector<8x32xf32>
    %59 = arith.mulf %56, %39#3 : vector<8x32xf32>
    %60 = arith.mulf %55, %57 : vector<8x32xf32>
    %61 = arith.addf %59, %60 : vector<8x32xf32>
    %62 = math.tanh %61 : vector<8x32xf32>
    %63 = arith.mulf %58, %62 : vector<8x32xf32>
    %c0_17 = arith.constant 0 : index
    %c0_18 = arith.constant 0 : index
    %64 = vector.load %arg4[%c0_17, %c0_18] : memref<32x128xf32, #tpu.memory_space<vmem>>, vector<32x128xf32>
    %cst_19 = arith.constant dense<0.000000e+00> : vector<8x128xf32>
    %65 = tpu.matmul %63, %64, %cst_19 {dimension_numbers = #tpu.dot_dimension_numbers<[1], [0], [0], [1], [0, 0, 1, 1], [], []>} : vector<8x32xf32>, vector<32x128xf32>, vector<8x128xf32> -> vector<8x128xf32>
    %c0_20 = arith.constant 0 : index
    %c0_21 = arith.constant 0 : index
    %66 = vector.load %arg5[%c0_20, %c0_21] : memref<1x128xf32, #tpu.memory_space<vmem>>, vector<1x128xf32>
    %67 = vector.broadcast %66 : vector<1x128xf32> to vector<8x128xf32>
    %68 = arith.addf %65, %67 : vector<8x128xf32>
    %cst_22 = arith.constant 0.000000e+00 : f32
    %69 = vector.broadcast %cst_22 : f32 to vector<8x128xf32>
    %70 = arith.maximumf %68, %69 : vector<8x128xf32>
    %c0_23 = arith.constant 0 : index
    %c0_24 = arith.constant 0 : index
    %71 = vector.load %arg6[%c0_23, %c0_24] : memref<128x128xf32, #tpu.memory_space<vmem>>, vector<128x128xf32>
    %cst_25 = arith.constant dense<0.000000e+00> : vector<8x128xf32>
    %72 = tpu.matmul %70, %71, %cst_25 {dimension_numbers = #tpu.dot_dimension_numbers<[1], [0], [0], [1], [0, 0, 1, 1], [], []>} : vector<8x128xf32>, vector<128x128xf32>, vector<8x128xf32> -> vector<8x128xf32>
    %c0_26 = arith.constant 0 : index
    %c0_27 = arith.constant 0 : index
    %73 = vector.load %arg7[%c0_26, %c0_27] : memref<1x128xf32, #tpu.memory_space<vmem>>, vector<1x128xf32>
    %74 = vector.broadcast %73 : vector<1x128xf32> to vector<8x128xf32>
    %75 = arith.addf %72, %74 : vector<8x128xf32>
    %c0_28 = arith.constant 0 : index
    %c0_29 = arith.constant 0 : index
    %76 = vector.load %arg8[%c0_28, %c0_29] : memref<8x128xf32, #tpu.memory_space<vmem>>, vector<8x128xf32>
    tpu.vector_store %arg8[%c0_28, %c0_29], %75 {strides = array<i32>} : memref<8x128xf32, #tpu.memory_space<vmem>>, vector<8x128xf32>,
    return
  }
}

</mosaic_0001>

<bundles_post_ra>
// kernel: news_lstm_eye_forward.1
= control target key start
LH: loop header
LB: loop body
LE: loop exit
PB: predicated region body
PF: predicated region fallthrough
CT: control target
= control target key end

     0   :  { %v31_v0 = vlaneseq  ;;  %v593_v4 = vmov 1.0   ;;  %s594_s29 = smov 64   ;;  %s595_s30 = smov 32   ;;  %v748_v48 = vmov 0.0   ;;  %v750_v49 = vmov 0.0   ;;  %s924_s1 = inlined_call_operand.vmem [shape: f32[8,8,128], index: 1, kind: input, shape index: {}]   ;;  %s925_s3 = inlined_call_operand.vmem [shape: f32[1,128], index: 3, kind: input, shape index: {}]   ;;  %s926_s0 = inlined_call_operand.<no memory space> [shape: s32[1], index: 0, kind: input, shape index: {}]   ;;  %s927_s4 = inlined_call_operand.vmem [shape: f32[32,128], index: 4, kind: input, shape index: {}]   ;;  %s928_s5 = inlined_call_operand.vmem [shape: f32[1,128], index: 5, kind: input, shape index: {}]   ;;  %s929_s6 = inlined_call_operand.vmem [shape: f32[128,128], index: 6, kind: input, shape index: {}]   ;;  %s930_s7 = inlined_call_operand.vmem [shape: f32[1,128], index: 7, kind: input, shape index: {}]   ;;  %s931_s8 = inlined_call_operand.vmem [shape: f32[8,128], index: 8, kind: output, shape index: {}]   ;;  %s932_s2 = inlined_call_operand.vmem [shape: f32[64,256], index: 2, kind: input, shape index: {}]  }
   0x1   :  { %v57_v2 = vld [vmem:[%s924_s1] sm:$0xff]  ;;  %v673_v31 = vld [vmem:[%s932_s2 + $0x8] sm:$0xff]  ;;  %v678_v32 = vld [vmem:[%s932_s2 + $0x10] sm:$0xff]  ;;  %p421_p0 = scmp.le.s32.totalorder %s926_s0, 1 }
   0x2   :  { %v32_v1 = vand.u32 127, %v31_v0  ;;  %v663_v29 = vld [vmem:[%s925_s3] ss:$0 sm:$0xff]  ;;  %v683_v33 = vld [vmem:[%s932_s2 + $0x18] sm:$0xff]  ;;  %v693_v35 = vld [vmem:[%s932_s2 + $0x28] sm:$0xff] }
   0x3   :  { %v668_v30 = vld [vmem:[%s932_s2] sm:$0xff]  ;;  %v698_v36 = vld [vmem:[%s932_s2 + $0x30] sm:$0xff]  ;;  %v703_v37 = vld [vmem:[%s932_s2 + $0x38] sm:$0xff] }
   0x4   :  { %vm33_vm0 = vcmp.ge.s32.totalorder %v32_v1, 64  ;;  %vm34_vm1 = vcmp.lt.s32.totalorder %v32_v1, 96  ;;  %v688_v34 = vld [vmem:[%s932_s2 + $0x20] sm:$0xff]  ;;  %v713_v39 = vld [vmem:[%s932_s2 + $0x48] sm:$0xff]  ;;  %v718_v40 = vld [vmem:[%s932_s2 + $0x50] sm:$0xff] }
   0x5   :  { %vm646_vm2 = vmand %vm33_vm0, %vm34_vm1  ;;  %v708_v38 = vld [vmem:[%s932_s2 + $0x40] sm:$0xff]  ;;  %v723_v41 = vld [vmem:[%s932_s2 + $0x58] sm:$0xff] }
   0x6   :  { %v652_v5 = vsel %vm646_vm2, 2.0, %v593_v4  ;;  %v728_v42 = vld [vmem:[%s932_s2 + $0x60] sm:$0xff]  ;;  %v733_v43 = vld [vmem:[%s932_s2 + $0x68] sm:$0xff]  ;;  %v738_v44 = vld [vmem:[%s932_s2 + $0x70] sm:$0xff] }
   0x7   :  { %v58_v6 = vmul.f32 %v57_v2, %v652_v5  ;;  %v743_v45 = vld [vmem:[%s932_s2 + $0x78] sm:$0xff]  ;;  %s762_s2 = smov (!%p421_p0), 1  }
   0x9   :  { %v419_v7 = vmul.f32 -1.442695, %v58_v6 }
   0xb   :  { %503 = vpow2.f32 %v419_v7 }
  0x11   :  { %v504_v8 = vpop.eup %503 }
  0x12   :  { %v62_v9 = vadd.f32 1.0, %v504_v8 }
  0x14   :  { %505 = vrcp.f32 %v62_v9  ;;  %v74_v12 = vand.u32 2147483648, %v62_v9  ;;  %vm68_vm3 = vweird.f32 %v62_v9  ;;  %v72_v14 = vand.u32 2147483647, %v62_v9 }
  0x16   :  { %v75_v16 = vor.u32 1.1754944e-38, %v74_v12  ;;  %vm73_vm6 = vcmp.eq.f32.partialorder %v72_v14, 8.507059e+37 }
  0x1a   :  { %v506_v10 = vpop.eup %505 }
  0x1b   :  { %v64_v11 = vmul.f32 %v506_v10, %v62_v9  ;;  %vm69_vm4 = vweird.f32 %v506_v10 }
  0x1c   :  { %vm70_vm5 = vmor %vm68_vm3, %vm69_vm4 }
  0x1d   :  { %v65_v13 = vsub.f32 1.0, %v64_v11 }
  0x1f   :  { %v66_v15 = vmul.f32 %v506_v10, %v65_v13 }
  0x21   :  { %v67_v17 = vadd.f32 %v506_v10, %v66_v15 }
  0x23   :  { %v71_v18 = vsel %vm70_vm5, %v506_v10, %v67_v17 }
  0x24   :  { %v76_v19 = vsel %vm73_vm6, %v75_v16, %v71_v18 }
  0x25   :  { %v78_v20 = vmul.f32 2.0, %v76_v19 }
  0x27   :  { %v420_v21 = vadd.f32 -1.0, %v78_v20 }
  0x29   :  { %v80_v22 = vsel %vm646_vm2, %v420_v21, %v76_v19 }
  0x2a   :  { %83 = vrot.lane.b32.xlu0 %v80_v22, %s594_s29  ;;  %v81_v25 = vmul.f32 0.0, %v80_v22 }
  0x9c   :  { %v84_v23 = vpop.permute.xlu0 %83 }
  0x9d   :  { %v86_v24 = vmul.f32 %v84_v23, %v80_v22 }
  0x9f   :  { %88 = vrot.lane.b32.xlu0 %v86_v24, %s595_s30 }
 0x111   :  { %v89_v26 = vpop.permute.xlu0 %88 }
 0x112   :  { %v91_v27 = vadd.f32 %v89_v26, %v81_v25  }
 0x114   :  { %507 = vtanh.f32 %v91_v27 }
 0x11a   :  { %v508_v28 = vpop.eup %507 }
 0x11b   :  { %94 = vrot.lane.b32.xlu1 %v508_v28, %s594_s29 }
 0x18c   :  { %408 = sbr.rel (%p421_p0) target bundleno = 1033 (0x409), region = 54 }
 0x18d   :  { %v95_v46 = vpop.permute.xlu1 %94 }
 0x18e   :  { %v97_v47 = vmul.f32 %v95_v46, %v80_v22  }
 0x190   :  { %v935_v50 = vmov %v97_v47 }
 0x191   :  { %v754_v51 = vmov 0.0   ;;  %v756_v52 = vmov 0.0  }
 0x192 LB: > { %130 = vmatpush.msra.mxu0 %v738_v44  ;;  %150 = vmatpush.msra.mxu1 %v743_v45  ;;  %s596_s23 = smov 32   ;;  %s597_s24 = smov 64   ;;  %vm116_vm7 = vcmask 261120   ;;  %vm118_vm8 = vcmask 523264   ;;  %s579_s2 = sphi %s762_s2, %s101_s2   ;;  %v575_v47 = vphi %v97_v47, %v938_v47   ;;  %v571_v27 = vphi %v91_v27, %v200_v27   ;;  %v567_v52 = vphi %v756_v52, %v937_v52   ;;  %v563_v51 = vphi %v754_v51, %v936_v51  }
 0x193   : > { %109 = vrot.lane.b32.xlu0 %v575_v47, %s596_s23  ;;  %s424_s25 = sshll.u32 %s579_s2, 3  ;;  %s101_s2 = sadd.s32 1, %s579_s2  }
 0x194   : > { %131 = vmatpush.msra.mxu0 %v728_v42  ;;  %151 = vmatpush.msra.mxu1 %v733_v43  ;;  %s163_s28 = scalar_lea.vmem %s924_s1, %s424_s25  ;;  %p100_p1 = scmp.ge.s32.totalorder %s101_s2, %s926_s0 }
 0x195   : > { %v164_v56 = vld [vmem:[%s163_s28] sm:$0xff] }
 0x196   : > { %132 = vmatpush.msra.mxu0 %v718_v40  ;;  %152 = vmatpush.msra.mxu1 %v723_v41 }
 0x198   : > { %133 = vmatpush.msra.mxu0 %v708_v38  ;;  %153 = vmatpush.msra.mxu1 %v713_v39 }
 0x19a   : > { %134 = vmatpush.msra.mxu0 %v698_v36  ;;  %154 = vmatpush.msra.mxu1 %v703_v37 }
 0x19b   : > { %113 = vrot.lane.b32.xlu0 %v567_v52, %s597_s24 }
 0x19c   : > { %135 = vmatpush.msra.mxu0 %v688_v34  ;;  %155 = vmatpush.msra.mxu1 %v693_v35 }
 0x19e   : > { %136 = vmatpush.msra.mxu0 %v678_v32  ;;  %156 = vmatpush.msra.mxu1 %v683_v33 }
 0x1a0   : > { %137 = vmatpush.msra.mxu0 %v668_v30  ;;  %157 = vmatpush.msra.mxu1 %v673_v31 }
 0x205   : > { %v110_v53 = vpop.permute.xlu0 %109 }
 0x20d   : > { %v114_v54 = vpop.permute.xlu0 %113 }
 0x20e   : > { %v117_v55 = vsel %vm116_vm7, %v110_v53, %v114_v54 }
 0x20f   : > { %422 = vmatmul.msk.f32.vlgmr.msra.gmra.mxu0 %vm118_vm8, %v117_v55  ;;  %423 = vmatmul.msk.f32.vlgmr.msra.gmra.mxu1 %vm118_vm8, %v117_v55 }
 0x28c   : > { %v139_v57 = vpop.f32.mrf.mxu0  ;;  %v159_v58 = vpop.f32.mrf.mxu1 }
 0x28d   : > { %v165_v59 = vadd.f32 %v164_v56, %v139_v57  ;;  %v166_v60 = vadd.f32 %v663_v29, %v159_v58 }
 0x28f   : > { %v167_v61 = vmul.f32 %v165_v59, %v652_v5  ;;  %v207_v62 = vmul.f32 %v166_v60, %v652_v5 }
 0x291   : > { %v425_v63 = vmul.f32 -1.442695, %v167_v61  ;;  %v427_v0 = vmul.f32 -1.442695, %v207_v62 }
 0x293   : > { %509 = vpow2.f32 %v425_v63 }
 0x294   : > { %511 = vpow2.f32 %v427_v0 }
 0x299   : > { %v510_v1 = vpop.eup %509 }
 0x29a   : > { %v512_v2 = vpop.eup %511  ;;  %v171_v4 = vadd.f32 1.0, %v510_v1 }
 0x29b   : > { %v211_v6 = vadd.f32 1.0, %v512_v2 }
 0x29c   : > { %513 = vrcp.f32 %v171_v4  ;;  %v183_v12 = vand.u32 2147483648, %v171_v4  ;;  %v181_v15 = vand.u32 2147483647, %v171_v4  ;;  %vm177_vm11 = vweird.f32 %v171_v4 }
 0x29d   : > { %515 = vrcp.f32 %v211_v6  ;;  %v223_v17 = vand.u32 2147483648, %v211_v6  ;;  %v221_v19 = vand.u32 2147483647, %v211_v6  ;;  %vm217_vm13 = vweird.f32 %v211_v6 }
 0x29e   : > { %v184_v20 = vor.u32 1.1754944e-38, %v183_v12  ;;  %vm182_vm14 = vcmp.eq.f32.partialorder %v181_v15, 8.507059e+37 }
 0x29f   : > { %v224_v25 = vor.u32 1.1754944e-38, %v223_v17  ;;  %vm222_vm0 = vcmp.eq.f32.partialorder %v221_v19, 8.507059e+37 }
 0x2a2   : > { %v514_v7 = vpop.eup %513 }
 0x2a3   : > { %v516_v8 = vpop.eup %515  ;;  %v173_v9 = vmul.f32 %v514_v7, %v171_v4  ;;  %vm178_vm9 = vweird.f32 %v514_v7 }
 0x2a4   : > { %v213_v10 = vmul.f32 %v516_v8, %v211_v6  ;;  %vm218_vm10 = vweird.f32 %v516_v8  ;;  %vm179_vm12 = vmor %vm177_vm11, %vm178_vm9 }
 0x2a5   : > { %v174_v11 = vsub.f32 1.0, %v173_v9  ;;  %vm219_vm15 = vmor %vm217_vm13, %vm218_vm10 }
 0x2a6   : > { %v214_v13 = vsub.f32 1.0, %v213_v10 }
 0x2a7   : > { %v175_v14 = vmul.f32 %v514_v7, %v174_v11 }
 0x2a8   : > { %v215_v16 = vmul.f32 %v516_v8, %v214_v13 }
 0x2a9   : > { %v176_v18 = vadd.f32 %v514_v7, %v175_v14 }
 0x2aa   : > { %v216_v21 = vadd.f32 %v516_v8, %v215_v16 }
 0x2ab   : > { %v180_v22 = vsel %vm179_vm12, %v514_v7, %v176_v18 }
 0x2ac   : > { %v185_v23 = vsel %vm182_vm14, %v184_v20, %v180_v22  ;;  %v220_v24 = vsel %vm219_vm15, %v516_v8, %v216_v21 }
 0x2ad   : > { %v187_v26 = vmul.f32 2.0, %v185_v23  ;;  %v225_v28 = vsel %vm222_vm0, %v224_v25, %v220_v24 }
 0x2ae   : > { %v227_v48 = vmul.f32 2.0, %v225_v28 }
 0x2af   : > { %v426_v46 = vadd.f32 -1.0, %v187_v26 }
 0x2b0   : > { %v428_v49 = vadd.f32 -1.0, %v227_v48 }
 0x2b1   : > { %v189_v47 = vsel %vm646_vm2, %v426_v46, %v185_v23 }
 0x2b2   : > { %192 = vrot.lane.b32.xlu1 %v189_v47, %s597_s24  ;;  %v229_v50 = vsel %vm646_vm2, %v428_v49, %v225_v28  ;;  %v190_v56 = vmul.f32 %v571_v27, %v189_v47 }
 0x2b3   : > { %v230_v58 = vmul.f32 %v563_v51, %v229_v50 }
 0x2ba   : > { %232 = vrot.lane.b32.xlu1 %v229_v50, %s597_s24 }
 0x324   : > { %v193_v52 = vpop.permute.xlu1 %192 }
 0x325   : > { %v195_v53 = vmul.f32 %v193_v52, %v189_v47 }
 0x327   : > { %197 = vrot.lane.b32.xlu2 %v195_v53, %s596_s23 }
 0x32c   : > { %v233_v54 = vpop.permute.xlu1 %232 }
 0x32d   : > { %v235_v55 = vmul.f32 %v233_v54, %v229_v50 }
 0x32f   : > { %237 = vrot.lane.b32.xlu2 %v235_v55, %s596_s23 }
 0x381   : > { %v198_v57 = vpop.permute.xlu2 %197 }
 0x382   : > { %v200_v27 = vadd.f32 %v198_v57, %v190_v56  }
 0x384   : > { %517 = vtanh.f32 %v200_v27 }
 0x389   : > { %v238_v59 = vpop.permute.xlu2 %237 }
 0x38a   : > { %v518_v60 = vpop.eup %517  ;;  %v240_v61 = vadd.f32 %v238_v59, %v230_v58  }
 0x38b   : > { %203 = vrot.lane.b32.xlu0 %v518_v60, %s597_s24 }
 0x38c   : > { %519 = vtanh.f32 %v240_v61  ;;  %v936_v51 = vmov %v240_v61  ;;  %v939_v48 = vmov (%p100_p1), %v240_v61 }
 0x392   : > { %v520_v62 = vpop.eup %519 }
 0x393   : > { %243 = vrot.lane.b32.xlu1 %v520_v62, %s597_s24 }
 0x3fd   : > { %v204_v63 = vpop.permute.xlu0 %203 }
 0x3fe   : > { %v206_v0 = vmul.f32 %v204_v63, %v189_v47  }
 0x400   : > { %v938_v47 = vmov %v206_v0 }
 0x404   :  { %103 = sbr.rel (!%p100_p1) target bundleno = 402 (0x192), region = 60 }
 0x405   : > { %v244_v1 = vpop.permute.xlu1 %243 }
 0x406   : > { %v246_v2 = vmul.f32 %v244_v1, %v229_v50   ;;  %v941_v50 = vmov (%p100_p1), %v206_v0 }
 0x408   : > { %v937_v52 = vmov %v246_v2  ;;  %v940_v49 = vmov (%p100_p1), %v246_v2 }
 0x409 PF:  { %248 = vrot.lane.b32.xlu0 %v591_v50, %s595_s30  ;;  %269 = vmatpush.msra.mxu0 %v743_v45  ;;  %vm255_vm1 = vcmask 261120   ;;  %vm257_vm3 = vcmask 523264   ;;  %v324_v13 = vld [vmem:[%s927_s4 + $0x18] sm:$0xff]  ;;  %v323_v3 = vld [vmem:[%s927_s4 + $0x10] sm:$0xff]  ;;  %v322_v14 = vld [vmem:[%s927_s4 + $0x8] sm:$0xff]  ;;  %v591_v50 = vphi %v935_v50, %v941_v50   ;;  %v587_v49 = vphi %v750_v49, %v940_v49   ;;  %v583_v48 = vphi %v748_v48, %v939_v48  }
 0x40a   :  { %346 = vmatpush.msra.mxu1 %v324_v13  ;;  %v321_v15 = vld [vmem:[%s927_s4] sm:$0xff]  ;;  %v370_v18 = vld [vmem:[%s929_s6 + $0x78] sm:$0xff]  ;;  %v369_v19 = vld [vmem:[%s929_s6 + $0x70] sm:$0xff] }
 0x40b   :  { %270 = vmatpush.msra.mxu0 %v733_v43  ;;  %375 = vmatpush.msra.mxu2 %v370_v18  ;;  %v368_v20 = vld [vmem:[%s929_s6 + $0x68] sm:$0xff]  ;;  %v367_v21 = vld [vmem:[%s929_s6 + $0x60] sm:$0xff]  ;;  %v366_v22 = vld [vmem:[%s929_s6 + $0x58] sm:$0xff] }
 0x40c   :  { %347 = vmatpush.msra.mxu1 %v323_v3  ;;  %v365_v23 = vld [vmem:[%s929_s6 + $0x50] sm:$0xff]  ;;  %v364_v24 = vld [vmem:[%s929_s6 + $0x48] sm:$0xff]  ;;  %v363_v25 = vld [vmem:[%s929_s6 + $0x40] sm:$0xff] }
 0x40d   :  { %271 = vmatpush.msra.mxu0 %v723_v41  ;;  %376 = vmatpush.msra.mxu2 %v369_v19  ;;  %v362_v26 = vld [vmem:[%s929_s6 + $0x38] sm:$0xff]  ;;  %v361_v28 = vld [vmem:[%s929_s6 + $0x30] sm:$0xff]  ;;  %v360_v46 = vld [vmem:[%s929_s6 + $0x28] sm:$0xff] }
 0x40e   :  { %348 = vmatpush.msra.mxu1 %v322_v14  ;;  %v359_v47 = vld [vmem:[%s929_s6 + $0x20] sm:$0xff]  ;;  %v357_v50 = vld [vmem:[%s929_s6 + $0x10] sm:$0xff]  ;;  %v356_v52 = vld [vmem:[%s929_s6 + $0x8] sm:$0xff] }
 0x40f   :  { %272 = vmatpush.msra.mxu0 %v713_v39  ;;  %377 = vmatpush.msra.mxu2 %v368_v20  ;;  %v355_v53 = vld [vmem:[%s929_s6] sm:$0xff] }
 0x410   :  { %349 = vmatpush.msra.mxu1 %v321_v15  ;;  %v521_v54 = vld [vmem:[%s928_s5] ss:$0 sm:$0xff] }
 0x411   :  { %252 = vrot.lane.b32.xlu0 %v587_v49, %s594_s29  ;;  %273 = vmatpush.msra.mxu0 %v703_v37  ;;  %v522_v58 = vld [vmem:[%s930_s7] ss:$0 sm:$0xff] }
 0x412   :  { %378 = vmatpush.msra.mxu2 %v367_v21 }
 0x413   :  { %274 = vmatpush.msra.mxu0 %v693_v35 }
 0x414   :  { %379 = vmatpush.msra.mxu2 %v366_v22 }
 0x415   :  { %275 = vmatpush.msra.mxu0 %v683_v33 }
 0x416   :  { %380 = vmatpush.msra.mxu2 %v365_v23 }
 0x417   :  { %276 = vmatpush.msra.mxu0 %v673_v31 }
 0x418   :  { %381 = vmatpush.msra.mxu2 %v364_v24 }
 0x41a   :  { %382 = vmatpush.msra.mxu2 %v363_v25 }
 0x41c   :  { %383 = vmatpush.msra.mxu2 %v362_v26 }
 0x41e   :  { %384 = vmatpush.msra.mxu2 %v361_v28 }
 0x420   :  { %385 = vmatpush.msra.mxu2 %v360_v46 }
 0x422   :  { %386 = vmatpush.msra.mxu2 %v359_v47 }
 0x47b   :  { %v249_v27 = vpop.permute.xlu0 %248 }
 0x483   :  { %v253_v30 = vpop.permute.xlu0 %252 }
 0x484   :  { %v256_v32 = vsel %vm255_vm1, %v249_v27, %v253_v30 }
 0x485   :  { %429 = vmatmul.msk.f32.vlgmr.msra.gmra.mxu0 %vm257_vm3, %v256_v32 }
 0x502   :  { %v278_v34 = vpop.f32.mrf.mxu0 }
 0x503   :  { %v279_v36 = vadd.f32 %v663_v29, %v278_v34 }
 0x505   :  { %v281_v38 = vmul.f32 %v279_v36, %v652_v5 }
 0x507   :  { %v430_v39 = vmul.f32 -1.442695, %v281_v38 }
 0x509   :  { %523 = vpow2.f32 %v430_v39 }
 0x50f   :  { %v524_v37 = vpop.eup %523 }
 0x510   :  { %v285_v35 = vadd.f32 1.0, %v524_v37 }
 0x512   :  { %525 = vrcp.f32 %v285_v35  ;;  %v297_v41 = vand.u32 2147483648, %v285_v35  ;;  %v295_v43 = vand.u32 2147483647, %v285_v35  ;;  %vm291_vm5 = vweird.f32 %v285_v35 }
 0x514   :  { %v298_v45 = vor.u32 1.1754944e-38, %v297_v41  ;;  %vm296_vm7 = vcmp.eq.f32.partialorder %v295_v43, 8.507059e+37 }
 0x518   :  { %v526_v33 = vpop.eup %525 }
 0x519   :  { %v287_v40 = vmul.f32 %v526_v33, %v285_v35  ;;  %vm292_vm4 = vweird.f32 %v526_v33 }
 0x51a   :  { %vm293_vm6 = vmor %vm291_vm5, %vm292_vm4 }
 0x51b   :  { %v288_v31 = vsub.f32 1.0, %v287_v40 }
 0x51d   :  { %v289_v42 = vmul.f32 %v526_v33, %v288_v31 }
 0x51f   :  { %v290_v44 = vadd.f32 %v526_v33, %v289_v42 }
 0x521   :  { %v294_v51 = vsel %vm293_vm6, %v526_v33, %v290_v44 }
 0x522   :  { %v299_v29 = vsel %vm296_vm7, %v298_v45, %v294_v51 }
 0x523   :  { %v301_v5 = vmul.f32 2.0, %v299_v29 }
 0x525   :  { %v431_v4 = vadd.f32 -1.0, %v301_v5 }
 0x527   :  { %v303_v6 = vsel %vm646_vm2, %v431_v4, %v299_v29 }
 0x528   :  { %306 = vrot.lane.b32.xlu1 %v303_v6, %s594_s29  ;;  %v304_v9 = vmul.f32 %v583_v48, %v303_v6  ;;  %v358_v48 = vld [vmem:[%s929_s6 + $0x18] sm:$0xff] }
 0x529   :  { %387 = vmatpush.msra.mxu2 %v358_v48 }
 0x52b   :  { %388 = vmatpush.msra.mxu2 %v357_v50 }
 0x52d   :  { %389 = vmatpush.msra.mxu2 %v356_v52 }
 0x52f   :  { %390 = vmatpush.msra.mxu2 %v355_v53 }
 0x59a   :  { %v307_v7 = vpop.permute.xlu1 %306 }
 0x59b   :  { %v309_v8 = vmul.f32 %v307_v7, %v303_v6 }
 0x59d   :  { %311 = vrot.lane.b32.xlu1 %v309_v8, %s595_s30 }
 0x60f   :  { %v312_v10 = vpop.permute.xlu1 %311 }
 0x610   :  { %v314_v11 = vadd.f32 %v312_v10, %v304_v9 }
 0x612   :  { %527 = vtanh.f32 %v314_v11 }
 0x618   :  { %v528_v12 = vpop.eup %527 }
 0x619   :  { %317 = vrot.lane.b32.xlu2 %v528_v12, %s594_s29 }
 0x673   :  { %v318_v16 = vpop.permute.xlu2 %317 }
 0x674   :  { %v320_v17 = vmul.f32 %v318_v16, %v303_v6 }
 0x676   :  { %330 = vrot.lane.b32.xlu2 %v320_v17, %s595_s30 }
 0x6d0   :  { %v331_v49 = vpop.permute.xlu2 %330 }
 0x6d1   :  { %432 = vmatmul.msk.f32.vlgmr.msra.gmra.mxu1 %vm255_vm1, %v331_v49 }
 0x74e   :  { %v351_v55 = vpop.f32.mrf.mxu1 }
 0x74f   :  { %v352_v56 = vadd.f32 %v521_v54, %v351_v55 }
 0x751   :  { %v354_v57 = vmax.f32 %v352_v56, 0.0 }
 0x753   :  { %391 = vmatmul.f32.vlgmr.msra.gmra.mxu2 %v354_v57 }
 0x7d6   :  { %v392_v59 = vpop.f32.mrf.mxu2 }
 0x7d7   :  { %v393_v60 = vadd.f32 %v522_v58, %v392_v59 }
 0x7d9   :  { %395 = vst [vmem:[%s931_s8] sm:$0xff] %v393_v60 }

</bundles_post_ra>
